<compile_context>
chip_gen: v5e
topology: v5e:2x2
jax: 0.10.0
libtpu: 0.0.40
codegen_flags: <defaults>
</compile_context>

<pallas_src>
import functools

import jax
import jax.numpy as jnp
from jax import lax
from jax.experimental import pallas as pl
from jax.experimental.pallas import tpu as pltpu


# ----------------------------------------------------------------------------
# Kernel
# ----------------------------------------------------------------------------
def _apply_activation(y, activation, valid_width):
    """Activation in f32. For softmax, mask padded lanes (>= valid_width)."""
    if activation == "relu":
        return jnp.maximum(y, 0.0)
    if activation == "sigmoid":
        return jax.nn.sigmoid(y)
    if activation == "tanh":
        return jnp.tanh(y)
    if activation == "softmax":
        # nn.Softmax(dim=1) on [batch, features] == softmax over last axis.
        if valid_width < y.shape[-1]:
            lane = lax.broadcasted_iota(jnp.int32, y.shape, y.ndim - 1)
            y = jnp.where(lane < valid_width, y, -1e30)
        m = jnp.max(y, axis=-1, keepdims=True)
        e = jnp.exp(y - m)
        # Exact division: rows sum to 1 (the approx reciprocal cost ~2.6e-4).
        return e / jnp.sum(e, axis=-1, keepdims=True)
    raise ValueError(f"Activation function '{activation}' not supported.")


def _fused_mlp_kernel(*refs, num_layers, hidden_activation, output_activation,
                      valid_douts, dout_pads):
    """refs = (x_ref, w0, w1, ..., w_{L-1}, bias_pack_ref, o_ref).

    Weights are pre-transposed + padded to [Din_pad, Dout_pad] bf16.
    bias_pack is [L, maxD] f32.  The layer loop is a static Python loop
    (fully unrolled); the running activation never leaves the chip.
    """
    x_ref = refs[0]
    o_ref = refs[-1]
    b_ref = refs[-2]
    w_refs = refs[1:-2]

    h = x_ref[...].astype(jnp.float32)                 # [TB, Din_pad]
    for li in range(num_layers):
        w = w_refs[li][...]                            # [Din_pad, Dout_pad] bf16
        dp = dout_pads[li]
        b = b_ref[li:li + 1, :][:, :dp]                # [1, Dout_pad] f32
        # bf16 MXU operands, f32 accumulation (cast point per perf review).
        y = jnp.dot(h.astype(jnp.bfloat16), w,
                    preferred_element_type=jnp.float32) + b
        act = output_activation if li == num_layers - 1 else hidden_activation
        h = _apply_activation(y, act, valid_douts[li])  # f32 elementwise (v5e-safe)

    o_ref[...] = h.astype(o_ref.dtype)                 # lane-dense (128-mult) store


# ----------------------------------------------------------------------------
# Wrapper
# ----------------------------------------------------------------------------
def _round_up(n, m):
    return (n + m - 1) // m * m


def prepare_params(params, lane=128):
    """ONE-TIME param prep (not per forward): transpose PyTorch (Dout, Din)
    weights to (Din, Dout), zero-pad feature dims to multiples of `lane`,
    cast weights to bf16, and pack all biases into a single (L, maxD) array."""
    dims = [(w.shape[1], w.shape[0]) for (w, _) in params]          # (din, dout)
    din_pads = [_round_up(d, lane) for d, _ in dims]
    dout_pads = [_round_up(d, lane) for _, d in dims]
    max_w = max(dout_pads)

    w_list = []
    b_pack = jnp.zeros((len(params), max_w), jnp.float32)
    for li, (w, b) in enumerate(params):
        din, dout = dims[li]
        wt = jnp.zeros((din_pads[li], dout_pads[li]), jnp.float32)
        wt = wt.at[:din, :dout].set(w.T)
        w_list.append(wt.astype(jnp.bfloat16))
        b_pack = b_pack.at[li, :dout].set(b)

    valid_douts = tuple(d for _, d in dims)
    return {
        "weights": w_list,
        "bias_pack": b_pack,
        "valid_douts": valid_douts,
        "dout_pads": tuple(dout_pads),
        "din_pad": din_pads[0],
    }


def mlp_forward(x, prepared, hidden_activation, output_activation, batch_tile=128):
    """Full MLP forward in a single Pallas kernel, gridded over batch tiles."""
    w_list = prepared["weights"]
    b_pack = prepared["bias_pack"]
    valid_douts = prepared["valid_douts"]
    dout_pads = prepared["dout_pads"]
    din_pad = prepared["din_pad"]

    B, din = x.shape
    num_layers = len(w_list)
    out_pad = dout_pads[-1]
    out_features = valid_douts[-1]

    # Batch tiling: stream x/out blocks, keep params resident in VMEM.
    tb = min(batch_tile, _round_up(B, 8))
    b_padded = _round_up(B, tb)
    x_pad = jnp.zeros((b_padded, din_pad), x.dtype).at[:B, :din].set(x)

    in_specs = [pl.BlockSpec((tb, din_pad), lambda i: (i, 0))]
    for w in w_list:
        in_specs.append(pl.BlockSpec(w.shape, lambda i: (0, 0)))     # resident
    in_specs.append(pl.BlockSpec(b_pack.shape, lambda i: (0, 0)))    # resident

    kernel = functools.partial(
        _fused_mlp_kernel,
        num_layers=num_layers,
        hidden_activation=hidden_activation,
        output_activation=output_activation,
        valid_douts=valid_douts,
        dout_pads=dout_pads,
    )

    out_full = pl.pallas_call(
        kernel,
        out_shape=jax.ShapeDtypeStruct((b_padded, out_pad), x.dtype),
        grid=(b_padded // tb,),
        in_specs=in_specs,
        out_specs=pl.BlockSpec((tb, out_pad), lambda i: (i, 0)),
        compiler_params=pltpu.CompilerParams(
            dimension_semantics=("parallel",)),   # shards batch tiles on v7x's 2 TCs
    )(x_pad, *w_list, b_pack)

    return out_full[:B, :out_features]


# ----------------------------------------------------------------------------
# Reference + init (for the self-test)
# ----------------------------------------------------------------------------
def init_mlp_params(key, input_size, hidden_layers, hidden_size, output_size):
    """Deterministic init mirroring MLP.__init__ shapes (PyTorch Linear style)."""
    params = []
    dims = [(input_size, hidden_size)]
    dims += [(hidden_size, hidden_size) for _ in range(hidden_layers)]
    dims += [(hidden_size, output_size)]
    for (din, dout) in dims:
        key, kw, kb = jax.random.split(key, 3)
        bound = 1.0 / jnp.sqrt(din)
        w = jax.random.uniform(kw, (dout, din), jnp.float32, -bound, bound)
        b = jax.random.uniform(kb, (dout,), jnp.float32, -bound, bound)
        params.append((w, b))
    return params


def _ref_act(y, name):
    if name == "relu":
        return jnp.maximum(y, 0.0)
    if name == "sigmoid":
        return jax.nn.sigmoid(y)
    if name == "tanh":
        return jnp.tanh(y)
    if name == "softmax":
        return jax.nn.softmax(y, axis=1)
    raise ValueError(name)


def mlp_reference(x, params, hidden_activation, output_activation, bf16_matmul=False):
    """Pure-JAX reference of the original module math.
    bf16_matmul=True matches the kernel's MXU numerics (bf16 operands, f32 acc)."""
    h = x
    for li, (w, b) in enumerate(params):
        if bf16_matmul:
            y = jnp.dot(h.astype(jnp.bfloat16), w.T.astype(jnp.bfloat16),
                        preferred_element_type=jnp.float32) + b
        else:
            y = h @ w.T + b
        act = output_activation if li == len(params) - 1 else hidden_activation
        h = _ref_act(y, act)
    return h


# ----------------------------------------------------------------------------
# Self-test
# ----------------------------------------------------------------------------
if __name__ == "__main__":
    batch = 16
    input_size = 16
    hidden_layers = 2
    hidden_size = 32
    output_size = 8
    hidden_activation = "relu"
    output_activation = "softmax"

    key = jax.random.PRNGKey(0)
    key, kx = jax.random.split(key)
    x = jax.random.normal(kx, (batch, input_size), dtype=jnp.float32)
    params = init_mlp_params(key, input_size, hidden_layers, hidden_size, output_size)

    prepared = prepare_params(params)                       # one-time prep
    # batch_tile=8 -> 2 grid steps: exercises streaming x/out with resident params.
    out = mlp_forward(x, prepared, hidden_activation, output_activation, batch_tile=8)
    out = jax.block_until_ready(out)
    assert out.shape == (batch, output_size)

    # 1) Numerics-matched reference (bf16 MXU operands, f32 accumulation): tight.
    ref_matched = mlp_reference(x, params, hidden_activation, output_activation,
                                bf16_matmul=True)
    err_m = jnp.max(jnp.abs(out - ref_matched))
    assert jnp.allclose(out, ref_matched, atol=2e-4, rtol=0), f"matched err={err_m}"

    # 2) Pure f32 reference (original module semantics): tolerance covers the
    #    intentional bf16 MXU operand rounding.
    ref_f32 = mlp_reference(x, params, hidden_activation, output_activation)
    err_f = jnp.max(jnp.abs(out - ref_f32))
    assert jnp.allclose(out, ref_f32, atol=3e-2, rtol=0), f"f32 err={err_f}"

    # 3) Softmax rows sum to 1 (exact division in the kernel).
    row_sums = jnp.sum(out, axis=1)
    assert jnp.allclose(row_sums, jnp.ones_like(row_sums), atol=1e-3), row_sums

    print("KERNEL_OK")
</pallas_src>

<mosaic_0001>
module attributes {stable_mosaic.version = 11 : i64} {
  func.func @_fused_mlp_kernel(%arg0: i32, %arg1: memref<8x128xf32, #tpu.memory_space<vmem>>, %arg2: memref<128x128xbf16, #tpu.memory_space<vmem>>, %arg3: memref<128x128xbf16, #tpu.memory_space<vmem>>, %arg4: memref<128x128xbf16, #tpu.memory_space<vmem>>, %arg5: memref<128x128xbf16, #tpu.memory_space<vmem>>, %arg6: memref<4x128xf32, #tpu.memory_space<vmem>>, %arg7: memref<8x128xf32, #tpu.memory_space<vmem>>) attributes {dimension_semantics = [#tpu.dimension_semantics<parallel>], iteration_bounds = array<i64: 2>, scalar_prefetch = 0 : i64, scratch_operands = 0 : i64, tpu.core_type = #tpu.core_type<tc>, window_params = [{transform_indices = @transform_0, window_bounds = array<i64: 8, 128>}, {pipeline_mode = #tpu.pipeline_mode<synchronous>, transform_indices = @transform_1, window_bounds = array<i64: 128, 128>}, {pipeline_mode = #tpu.pipeline_mode<synchronous>, transform_indices = @transform_2, window_bounds = array<i64: 128, 128>}, {pipeline_mode = #tpu.pipeline_mode<synchronous>, transform_indices = @transform_3, window_bounds = array<i64: 128, 128>}, {pipeline_mode = #tpu.pipeline_mode<synchronous>, transform_indices = @transform_4, window_bounds = array<i64: 128, 128>}, {pipeline_mode = #tpu.pipeline_mode<synchronous>, transform_indices = @transform_5, window_bounds = array<i64: 4, 128>}, {transform_indices = @transform_6, window_bounds = array<i64: 8, 128>}]} {
    %c0 = arith.constant 0 : index
    %c0_0 = arith.constant 0 : index
    %0 = vector.load %arg1[%c0, %c0_0] : memref<8x128xf32, #tpu.memory_space<vmem>>, vector<8x128xf32>
    %c0_1 = arith.constant 0 : index
    %c0_2 = arith.constant 0 : index
    %1 = vector.load %arg2[%c0_1, %c0_2] : memref<128x128xbf16, #tpu.memory_space<vmem>>, vector<128x128xbf16>
    %c0_3 = arith.constant 0 : index
    %c0_4 = arith.constant 0 : index
    %2 = vector.load %arg6[%c0_3, %c0_4] : memref<4x128xf32, #tpu.memory_space<vmem>>, vector<1x128xf32>
    %3 = arith.truncf %0 : vector<8x128xf32> to vector<8x128xbf16>
    %cst = arith.constant dense<0.000000e+00> : vector<8x128xf32>
    %4 = tpu.matmul %3, %1, %cst {dimension_numbers = #tpu.dot_dimension_numbers<[1], [0], [0], [1], [0, 0, 1, 1], [], []>} : vector<8x128xbf16>, vector<128x128xbf16>, vector<8x128xf32> -> vector<8x128xf32>
    %5 = vector.broadcast %2 : vector<1x128xf32> to vector<8x128xf32>
    %6 = arith.addf %4, %5 : vector<8x128xf32>
    %cst_5 = arith.constant 0.000000e+00 : f32
    %7 = vector.broadcast %cst_5 : f32 to vector<8x128xf32>
    %8 = arith.maximumf %6, %7 : vector<8x128xf32>
    %c0_6 = arith.constant 0 : index
    %c0_7 = arith.constant 0 : index
    %9 = vector.load %arg3[%c0_6, %c0_7] : memref<128x128xbf16, #tpu.memory_space<vmem>>, vector<128x128xbf16>
    %c1 = arith.constant 1 : index
    %c0_8 = arith.constant 0 : index
    %10 = vector.load %arg6[%c1, %c0_8] : memref<4x128xf32, #tpu.memory_space<vmem>>, vector<1x128xf32>
    %11 = arith.truncf %8 : vector<8x128xf32> to vector<8x128xbf16>
    %cst_9 = arith.constant dense<0.000000e+00> : vector<8x128xf32>
    %12 = tpu.matmul %11, %9, %cst_9 {dimension_numbers = #tpu.dot_dimension_numbers<[1], [0], [0], [1], [0, 0, 1, 1], [], []>} : vector<8x128xbf16>, vector<128x128xbf16>, vector<8x128xf32> -> vector<8x128xf32>
    %13 = vector.broadcast %10 : vector<1x128xf32> to vector<8x128xf32>
    %14 = arith.addf %12, %13 : vector<8x128xf32>
    %cst_10 = arith.constant 0.000000e+00 : f32
    %15 = vector.broadcast %cst_10 : f32 to vector<8x128xf32>
    %16 = arith.maximumf %14, %15 : vector<8x128xf32>
    %c0_11 = arith.constant 0 : index
    %c0_12 = arith.constant 0 : index
    %17 = vector.load %arg4[%c0_11, %c0_12] : memref<128x128xbf16, #tpu.memory_space<vmem>>, vector<128x128xbf16>
    %c2 = arith.constant 2 : index
    %c0_13 = arith.constant 0 : index
    %18 = vector.load %arg6[%c2, %c0_13] : memref<4x128xf32, #tpu.memory_space<vmem>>, vector<1x128xf32>
    %19 = arith.truncf %16 : vector<8x128xf32> to vector<8x128xbf16>
    %cst_14 = arith.constant dense<0.000000e+00> : vector<8x128xf32>
    %20 = tpu.matmul %19, %17, %cst_14 {dimension_numbers = #tpu.dot_dimension_numbers<[1], [0], [0], [1], [0, 0, 1, 1], [], []>} : vector<8x128xbf16>, vector<128x128xbf16>, vector<8x128xf32> -> vector<8x128xf32>
    %21 = vector.broadcast %18 : vector<1x128xf32> to vector<8x128xf32>
    %22 = arith.addf %20, %21 : vector<8x128xf32>
    %cst_15 = arith.constant 0.000000e+00 : f32
    %23 = vector.broadcast %cst_15 : f32 to vector<8x128xf32>
    %24 = arith.maximumf %22, %23 : vector<8x128xf32>
    %c0_16 = arith.constant 0 : index
    %c0_17 = arith.constant 0 : index
    %25 = vector.load %arg5[%c0_16, %c0_17] : memref<128x128xbf16, #tpu.memory_space<vmem>>, vector<128x128xbf16>
    %c3 = arith.constant 3 : index
    %c0_18 = arith.constant 0 : index
    %26 = vector.load %arg6[%c3, %c0_18] : memref<4x128xf32, #tpu.memory_space<vmem>>, vector<1x128xf32>
    %27 = arith.truncf %24 : vector<8x128xf32> to vector<8x128xbf16>
    %cst_19 = arith.constant dense<0.000000e+00> : vector<8x128xf32>
    %28 = tpu.matmul %27, %25, %cst_19 {dimension_numbers = #tpu.dot_dimension_numbers<[1], [0], [0], [1], [0, 0, 1, 1], [], []>} : vector<8x128xbf16>, vector<128x128xbf16>, vector<8x128xf32> -> vector<8x128xf32>
    %29 = vector.broadcast %26 : vector<1x128xf32> to vector<8x128xf32>
    %30 = arith.addf %28, %29 : vector<8x128xf32>
    %31 = tpu.iota {dimensions = array<i32: 1>} : vector<8x128xi32>
    %c8_i32 = arith.constant 8 : i32
    %32 = vector.broadcast %c8_i32 : i32 to vector<8x128xi32>
    %33 = arith.cmpi slt, %31, %32 : vector<8x128xi32>
    %cst_20 = arith.constant -1.000000e+30 : f32
    %34 = vector.broadcast %cst_20 : f32 to vector<8x128xf32>
    %35 = arith.select %33, %30, %34 : vector<8x128xi1>, vector<8x128xf32>
    %cst_21 = arith.constant dense<0xFF800000> : vector<8xf32>
    %36 = vector.multi_reduction <maximumf>, %35, %cst_21 [1] : vector<8x128xf32> to vector<8xf32>
    %37 = vector.shape_cast %36 : vector<8xf32> to vector<8x1xf32>
    %38 = vector.broadcast %37 : vector<8x1xf32> to vector<8x128xf32>
    %39 = arith.subf %35, %38 : vector<8x128xf32>
    %40 = math.exp %39 : vector<8x128xf32>
    %cst_22 = arith.constant dense<0.000000e+00> : vector<8xf32>
    %41 = vector.multi_reduction <add>, %40, %cst_22 [1] : vector<8x128xf32> to vector<8xf32>
    %42 = vector.shape_cast %41 : vector<8xf32> to vector<8x1xf32>
    %43 = vector.broadcast %42 : vector<8x1xf32> to vector<8x128xf32>
    %44 = arith.divf %40, %43 : vector<8x128xf32>
    %c0_23 = arith.constant 0 : index
    %c0_24 = arith.constant 0 : index
    %45 = vector.load %arg7[%c0_23, %c0_24] : memref<8x128xf32, #tpu.memory_space<vmem>>, vector<8x128xf32>
    tpu.vector_store %arg7[%c0_23, %c0_24], %44 {strides = array<i32>} : memref<8x128xf32, #tpu.memory_space<vmem>>, vector<8x128xf32>,
    return
  }
  func.func @transform_0(%arg0: i32) -> (i32, i32) {
    %c0_i32 = arith.constant 0 : i32
    %c0_i32_0 = arith.constant 0 : i32
    return %arg0, %c0_i32 : i32, i32
  }
  func.func @transform_1(%arg0: i32) -> (i32, i32) {
    %c0_i32 = arith.constant 0 : i32
    %c0_i32_0 = arith.constant 0 : i32
    %c0_i32_1 = arith.constant 0 : i32
    return %c0_i32, %c0_i32_0 : i32, i32
  }
  func.func @transform_2(%arg0: i32) -> (i32, i32) {
    %c0_i32 = arith.constant 0 : i32
    %c0_i32_0 = arith.constant 0 : i32
    %c0_i32_1 = arith.constant 0 : i32
    return %c0_i32, %c0_i32_0 : i32, i32
  }
  func.func @transform_3(%arg0: i32) -> (i32, i32) {
    %c0_i32 = arith.constant 0 : i32
    %c0_i32_0 = arith.constant 0 : i32
    %c0_i32_1 = arith.constant 0 : i32
    return %c0_i32, %c0_i32_0 : i32, i32
  }
  func.func @transform_4(%arg0: i32) -> (i32, i32) {
    %c0_i32 = arith.constant 0 : i32
    %c0_i32_0 = arith.constant 0 : i32
    %c0_i32_1 = arith.constant 0 : i32
    return %c0_i32, %c0_i32_0 : i32, i32
  }
  func.func @transform_5(%arg0: i32) -> (i32, i32) {
    %c0_i32 = arith.constant 0 : i32
    %c0_i32_0 = arith.constant 0 : i32
    %c0_i32_1 = arith.constant 0 : i32
    return %c0_i32, %c0_i32_0 : i32, i32
  }
  func.func @transform_6(%arg0: i32) -> (i32, i32) {
    %c0_i32 = arith.constant 0 : i32
    %c0_i32_0 = arith.constant 0 : i32
    return %arg0, %c0_i32 : i32, i32
  }
}

</mosaic_0001>

<bundles_post_ra>
// kernel: tpu_custom_call.1
= control target key start
LH: loop header
LB: loop body
LE: loop exit
PB: predicated region body
PF: predicated region fallthrough
CT: control target
= control target key end

     0   :  { %s1540_s0 = inlined_call_operand.hbm [shape: f32[16,128], index: 0, kind: input, shape index: {}]   ;;  %s1541_s1 = inlined_call_operand.hbm [shape: bf16[128,128], index: 1, kind: input, shape index: {}]   ;;  %s1542_s2 = inlined_call_operand.hbm [shape: bf16[128,128], index: 2, kind: input, shape index: {}]   ;;  %s1543_s3 = inlined_call_operand.hbm [shape: bf16[128,128], index: 3, kind: input, shape index: {}]   ;;  %s1544_s4 = inlined_call_operand.hbm [shape: bf16[128,128], index: 4, kind: input, shape index: {}]   ;;  %s1545_s5 = inlined_call_operand.vmem [shape: f32[4,128], index: 5, kind: input, shape index: {}]   ;;  %s1546_s6 = inlined_call_operand.hbm [shape: f32[16,128], index: 6, kind: output, shape index: {}]  }
   0x1   :  { %1547 = sst [smem:[#allocation16_spill]] %s1541_s1 }
   0x2   :  { %11 = vsyncpa [#allocation3], 0 }
   0x3   :  { %13 = vsyncpa [#allocation3 + $0x1], 0 }
   0x4   :  { %14 = vsyncpa [#allocation6], 0 }
   0x5   :  { %15 = vsyncpa [#allocation9], 0 }
   0x6   :  { %16 = vsyncpa [#allocation4], 0 }
   0x7   :  { %18 = vsyncpa [#allocation4 + $0x1], 0  ;;  %s1354_s21 = smov 0   ;;  %s1356_s22 = smov 0  }
   0x8   :  { %s1358_s23 = smov 0   ;;  %s1360_s24 = smov 0  }
   0x9 LB: > { %s1548_s1 = sld [smem:[#allocation16_spill]]  ;;  %s1378_s28 = sadd.s32 4294967295, %s1311_s24   ;;  %s1311_s24 = sphi %s1360_s24, %s1560_s24   ;;  %s1307_s23 = sphi %s1358_s23, %s1559_s23   ;;  %s1303_s22 = sphi %s1356_s22, %s1558_s22   ;;  %s1299_s21 = sphi %s1354_s21, %s1557_s21  }
   0xa   : > { %p811_p0 = scmp.ge.s32.totalorder %s1311_s24, 1  ;;  %p45_p1 = scmp.eq.s32.totalorder %s1378_s28, 0 }
   0xb   : > { %p186_p2 = scmp.lt.s32.totalorder %s1311_s24, 3  ;;  %s1313_s30 = smov [#allocation5]  }
   0xc   : > { %s199_s7 = sshll.u32 %s1313_s30, 4  ;;  %s225_s10 = sshll.u32 %s1543_s3, 4  ;;  %s200_s7 = int_to_ptr.vmem [resolvable:$true] %s199_s7  ;;  %s226_s10 = int_to_ptr.hbm [resolvable:$true] %s225_s10 }
   0xd   : > { %p1383_p3 = pnand %p811_p0, %p186_p2  ;;  %s211_s14 = sshll.u32 %s1542_s2, 4  ;;  %s212_s14 = int_to_ptr.hbm [resolvable:$true] %s211_s14 }
   0xe   : > { %s1314_s15 = smov [#allocation8]   ;;  %s1315_s17 = smov 64  }
   0xf   : > { %s197_s27 = sshll.u32 %s1548_s1, 4  ;;  %p1010_p4 = pneg %p1383_p3  ;;  %s198_s27 = int_to_ptr.hbm [resolvable:$true] %s197_s27 }
  0x10   : > { %s227_s16 = sshll.u32 %s1314_s15, 4  ;;  %s1316_s18 = smov 4   ;;  %s228_s16 = int_to_ptr.vmem [resolvable:$true] %s227_s16 }
  0x11   : > { %p1395_p6 = pnand %p1010_p4, %p45_p1  ;;  %s239_s25 = sshll.u32 %s1544_s4, 4  ;;  %s240_s25 = int_to_ptr.hbm [resolvable:$true] %s239_s25 }
  0x12   : > { %s1317_s26 = smov [#allocation7]   ;;  %s810_s8 = sadd.s32 4294967294, %s1311_s24  }
  0x13   : > { %1013 = dma.hbm_to_vmem [thread:$0]  (!%p1395_p6), %s198_s27, 1024, %s200_s7, [#allocation6], %s1315_s17, %s1315_s17, %s1316_s18  }
  0x14   : > { %1019 = dma.hbm_to_vmem [thread:$0]  (!%p1395_p6), %s226_s10, 1024, %s228_s16, [#allocation9], %s1315_s17, %s1315_s17, %s1316_s18  }
  0x15   : > { %s213_s30 = sshll.u32 %s1317_s26, 4  ;;  %s1318_s27 = smov [#allocation10]   ;;  %s214_s30 = int_to_ptr.vmem [resolvable:$true] %s213_s30 }
  0x16   : > { %1016 = dma.hbm_to_vmem [thread:$0]  (!%p1395_p6), %s212_s14, 1024, %s214_s30, [#allocation6], %s1315_s17, %s1315_s17, %s1316_s18  }
  0x17   : > { %s241_s7 = sshll.u32 %s1318_s27, 4  ;;  %s1415_s9 = sadd.s32 1, %s1311_s24   ;;  %s242_s7 = int_to_ptr.vmem [resolvable:$true] %s241_s7 }
  0x18   : > { %1022 = dma.hbm_to_vmem [thread:$0]  (!%p1395_p6), %s240_s25, 1024, %s242_s7, [#allocation9], %s1315_s17, %s1315_s17, %s1316_s18  }
  0x19   : > { %s28_s10 = ssub.s32 %s1311_s24, %s1415_s9  ;;  %s31_s12 = sadd.s32 1, %s1307_s23 }
  0x1a   : > { %p29_p7 = scmp.eq.s32.totalorder %s28_s10, 0  ;;  %p38_p8 = scmp.ne.s32.totalorder %s1307_s23, %s1303_s22 }
  0x1b   : > { %p39_p9 = scmp.eq.s32.totalorder %s1311_s24, 0  ;;  %p44_p10 = scmp.ne.s32.totalorder %s1303_s22, %s1299_s21 }
  0x1c   : > { %s1426_s13 = scalar_select %p29_p7, %s1307_s23, %s31_s12  }
  0x1d   : > { %p1428_p11 = por %p39_p9, %p38_p8  ;;  %p1434_p12 = por %p45_p1, %p44_p10 }
  0x1e   : > { %p173_p13 = scmp.eq.s32.totalorder %s1378_s28, 1  ;;  %p179_p0 = scmp.eq.s32.totalorder %s810_s8, 1 }
  0x1f   : > { %p1035_p2 = scmp.lt.s32.totalorder %s1311_s24, 2  ;;  %s258_s15 = sand.u32 1, %s1307_s23  }
  0x20   : > { %p1441_p4 = por %p173_p13, %p38_p8  ;;  %p1445_p6 = por %p179_p0, %p44_p10 }
  0x21   : > { %s817_s18 = sshll.u32 %s258_s15, 3  ;;  %s818_s19 = sshll.u32 %s1311_s24, 3 }
  0x22   : > { %s266_s26 = scalar_lea.hbm %s1540_s0, %s818_s19  ;;  %s262_s30 = scalar_lea.vmem [#allocation2], %s817_s18 }
  0x23   : > { %s270_s27 = sshll.u32 %s262_s30, 4  ;;  %s268_s7 = sshll.u32 %s266_s26, 4  ;;  %s271_s27 = int_to_ptr.vmem [resolvable:$true] %s270_s27  ;;  %s269_s7 = int_to_ptr.hbm [resolvable:$true] %s268_s7 }
  0x24   : > { %p1455_p7 = pnand %p1035_p2, %p1428_p11  ;;  %s259_s10 = scalar_lea.sflag [#allocation3], %s258_s15 }
  0x25   : > { %s1207_s12 = sshra.s32 %s269_s7, 4  ;;  %s1214_s20 = scalar_lea.hbm %s1540_s0, 16  ;;  %s1208_s12 = int_to_ptr.hbm [resolvable:$true] %s1207_s12 }
  0x26   : > { %s1209_s1 = scalar_lea.hbm %s1208_s12, 8  ;;  %p1211_p9 = pneg %p1455_p7 }
  0x27   : > { %p1210_p8 = scmp.ne.s32.totalorder %s1208_s12, %s1209_s1  ;;  %p1215_p11 = scmp.lt.s32.totalorder %s1208_s12, %s1540_s0 }
  0x28   : > { %p1216_p0 = scmp.lt.s32.totalorder %s1214_s20, %s1209_s1 }
  0x29   : > { %p1212_p10 = pnand %p1211_p9, %p1210_p8 }
  0x2a   : > { %p1217_p2 = por %p1216_p0, %p1215_p11 }
  0x2b   : > { %p1213_p13 = pneg %p1212_p10 }
  0x2d   : > { %p1218_p5 = pnand %p1217_p2, %p1213_p13 }
  0x2f   : > { %1221 = shalt.err (!%p1218_p5)
}
  0x30   : > { %1026 = dma.hbm_to_vmem [thread:$0]  (!%p1455_p7), %s269_s7, 128, %s271_s27, %s259_s10  }
  0x31   : > { %279 = sbr.rel (%p1383_p3) target bundleno = 893 (0x37d), region = 44  ;;  %s1472_s15 = sand.u32 (!%p1383_p3), 1, %s1303_s22  }
  0x32   : > { %s820_s26 = sshll.u32 (!%p1383_p3), %s1472_s15, 3  ;;  %s282_s30 = scalar_lea.sflag (!%p1383_p3), [#allocation3], %s1472_s15 }
  0x33   : > { %s1478_s1 = scalar_lea.vmem (!%p1383_p3), [#allocation2], %s820_s26 }
  0x36   : > { %1282 = dma.done.wait (%p1434_p12), %s282_s30, 128  }
  0x37   : > { %1284 = vsyncadd (%p1434_p12), %s282_s30, 4294967168 }
  0x38   : > { %1286 = dma.done.wait (%p45_p1), [#allocation6], 2048  }
  0x39   : > { %1288 = vsyncadd (%p45_p1), [#allocation6], 4294965248 }
  0x3a   : > { %1290 = dma.done.wait (%p45_p1), [#allocation9], 2048  }
  0x3b   : > { %1292 = vsyncadd (%p45_p1), [#allocation9], 4294965248  ;;  %v965_v0 = vld [vmem:[#allocation5 + $0x38] sm:$0xff]  ;;  %v964_v1 = vld [vmem:[#allocation5 + $0x30] sm:$0xff]  ;;  %v659_v52 = vlaneseq  ;;  %s955_s19 = sshll.u32 %s1378_s28, 3  ;;  %s334_s30 = scalar_lea.vmem [#allocation11], %s820_s26 }
  0x3c   : > { %403 = vmatpush.bf16.msra.mxu0 %v965_v0  ;;  %v973_v2 = vld [vmem:[#allocation7 + $0x38] sm:$0xff]  ;;  %v972_v3 = vld [vmem:[#allocation7 + $0x30] sm:$0xff]  ;;  %v963_v4 = vld [vmem:[#allocation5 + $0x28] sm:$0xff]  ;;  %s697_s14 = scalar_lea.hbm %s1546_s6, %s955_s19  ;;  %s687_s28 = scalar_lea.sflag [#allocation4], %s1472_s15 }
  0x3d   : > { %484 = vmatpush.bf16.msra.mxu1 %v973_v2  ;;  %v971_v5 = vld [vmem:[#allocation7 + $0x28] sm:$0xff]  ;;  %v962_v6 = vld [vmem:[#allocation5 + $0x20] sm:$0xff]  ;;  %v961_v8 = vld [vmem:[#allocation5 + $0x18] sm:$0xff]  ;;  %v660_v53 = vand.u32 127, %v659_v52  ;;  %s701_s29 = sshll.u32 %s697_s14, 4  ;;  %s1257_s26 = scalar_lea.hbm %s1546_s6, 16  ;;  %s702_s29 = int_to_ptr.hbm [resolvable:$true] %s701_s29 }
  0x3e   : > { %v970_v7 = vld [vmem:[#allocation7 + $0x20] sm:$0xff]  ;;  %v969_v9 = vld [vmem:[#allocation7 + $0x18] sm:$0xff]  ;;  %v960_v10 = vld [vmem:[#allocation5 + $0x10] sm:$0xff]  ;;  %s1251_s11 = sshra.s32 %s702_s29, 4  ;;  %s1252_s11 = int_to_ptr.hbm [resolvable:$true] %s1251_s11 }
  0x3f   : > { %v968_v11 = vld [vmem:[#allocation7 + $0x10] sm:$0xff]  ;;  %v959_v12 = vld [vmem:[#allocation5 + $0x8] sm:$0xff]  ;;  %v958_v13 = vld [vmem:[#allocation5] sm:$0xff]  ;;  %vm661_vm0 = vcmp.lt.s32.totalorder %v660_v53, 8  ;;  %s1253_s27 = scalar_lea.hbm %s1252_s11, 8  ;;  %p1258_p12 = scmp.lt.s32.totalorder %s1252_s11, %s1546_s6 }
  0x40   : > { %404 = vmatpush.bf16.msra.mxu0 %v964_v1  ;;  %v335_v14 = vld [vmem:[%s1478_s1] sm:$0xff]  ;;  %v967_v16 = vld [vmem:[#allocation7 + $0x8] sm:$0xff]  ;;  %v966_v17 = vld [vmem:[#allocation7] sm:$0xff]  ;;  %s699_s1 = sshll.u32 %s334_s30, 4  ;;  %p1254_p1 = scmp.ne.s32.totalorder %s1252_s11, %s1253_s27  ;;  %s700_s1 = int_to_ptr.vmem [resolvable:$true] %s699_s1 }
  0x41   : > { %485 = vmatpush.bf16.msra.mxu1 %v972_v3  ;;  %v353_v15 = vpack.c.bf16 %v335_v14, %v335_v14  ;;  %v981_v18 = vld [vmem:[#allocation8 + $0x38] sm:$0xff]  ;;  %v980_v19 = vld [vmem:[#allocation8 + $0x30] sm:$0xff]  ;;  %v979_v20 = vld [vmem:[#allocation8 + $0x28] sm:$0xff]  ;;  %p1259_p7 = scmp.lt.s32.totalorder %s1257_s26, %s1253_s27 }
  0x42   : > { %565 = vmatpush.bf16.msra.mxu2 %v981_v18  ;;  %v978_v21 = vld [vmem:[#allocation8 + $0x20] sm:$0xff]  ;;  %v977_v22 = vld [vmem:[#allocation8 + $0x18] sm:$0xff]  ;;  %v976_v23 = vld [vmem:[#allocation8 + $0x10] sm:$0xff]  ;;  %p1255_p3 = pnand %p1254_p1, %p1441_p4 }
  0x43   : > { %v1079_v24 = vld [vmem:[%s1545_s5] ss:$0 sm:$0xff]  ;;  %v975_v30 = vld [vmem:[#allocation8 + $0x8] sm:$0xff]  ;;  %v974_v31 = vld [vmem:[#allocation8] sm:$0xff]  ;;  %p1260_p8 = por %p1259_p7, %p1258_p12 }
  0x44   : > { %405 = vmatpush.bf16.msra.mxu0 %v963_v4  ;;  %v989_v32 = vld [vmem:[#allocation10 + $0x38] sm:$0xff]  ;;  %v988_v33 = vld [vmem:[#allocation10 + $0x30] sm:$0xff]  ;;  %v987_v34 = vld [vmem:[#allocation10 + $0x28] sm:$0xff]  ;;  %p1256_p5 = pneg %p1255_p3 }
  0x45   : > { %486 = vmatpush.bf16.msra.mxu1 %v971_v5  ;;  %646 = vmatpush.bf16.msra.mxu3 %v989_v32  ;;  %v986_v35 = vld [vmem:[#allocation10 + $0x20] sm:$0xff]  ;;  %v985_v36 = vld [vmem:[#allocation10 + $0x18] sm:$0xff]  ;;  %v984_v37 = vld [vmem:[#allocation10 + $0x10] sm:$0xff] }
  0x46   : > { %566 = vmatpush.bf16.msra.mxu2 %v980_v19  ;;  %v1080_v38 = vld [vmem:[%s1545_s5 + $0x1] ss:$0 sm:$0xff]  ;;  %v983_v44 = vld [vmem:[#allocation10 + $0x8] sm:$0xff]  ;;  %v982_v45 = vld [vmem:[#allocation10] sm:$0xff]  ;;  %p1261_p9 = pnand %p1260_p8, %p1256_p5 }
  0x47   : > { %v1081_v46 = vld [vmem:[%s1545_s5 + $0x2] ss:$0 sm:$0xff]  ;;  %v1082_v54 = vld [vmem:[%s1545_s5 + $0x3] ss:$0 sm:$0xff] }
  0x48   : > { %406 = vmatpush.bf16.msra.mxu0 %v962_v6 }
  0x49   : > { %487 = vmatpush.bf16.msra.mxu1 %v970_v7  ;;  %647 = vmatpush.bf16.msra.mxu3 %v988_v33 }
  0x4a   : > { %567 = vmatpush.bf16.msra.mxu2 %v979_v20 }
  0x4c   : > { %407 = vmatpush.bf16.msra.mxu0 %v961_v8 }
  0x4d   : > { %488 = vmatpush.bf16.msra.mxu1 %v969_v9  ;;  %648 = vmatpush.bf16.msra.mxu3 %v987_v34 }
  0x4e   : > { %568 = vmatpush.bf16.msra.mxu2 %v978_v21 }
  0x50   : > { %408 = vmatpush.bf16.msra.mxu0 %v960_v10 }
  0x51   : > { %489 = vmatpush.bf16.msra.mxu1 %v968_v11  ;;  %649 = vmatpush.bf16.msra.mxu3 %v986_v35 }
  0x52   : > { %569 = vmatpush.bf16.msra.mxu2 %v977_v22 }
  0x54   : > { %409 = vmatpush.bf16.msra.mxu0 %v959_v12 }
  0x55   : > { %490 = vmatpush.bf16.msra.mxu1 %v967_v16  ;;  %650 = vmatpush.bf16.msra.mxu3 %v985_v36 }
  0x56   : > { %570 = vmatpush.bf16.msra.mxu2 %v976_v23 }
  0x58   : > { %410 = vmatpush.bf16.msra.mxu0 %v958_v13 }
  0x59   : > { %491 = vmatpush.bf16.msra.mxu1 %v966_v17  ;;  %651 = vmatpush.bf16.msra.mxu3 %v984_v37 }
  0x5a   : > { %571 = vmatpush.bf16.msra.mxu2 %v975_v30 }
  0x5b   : > { %411 = vmatmul.bf16.vlgmr.msra.gmra.mxu0 %v353_v15 }
  0x5d   : > { %652 = vmatpush.bf16.msra.mxu3 %v983_v44 }
  0x5e   : > { %572 = vmatpush.bf16.msra.mxu2 %v974_v31 }
  0x61   : > { %653 = vmatpush.bf16.msra.mxu3 %v982_v45 }
  0xd8   : > { %v412_v25 = vpop.f32.mrf.mxu0 }
  0xd9   : > { %v413_v26 = vadd.f32 %v1079_v24, %v412_v25 }
  0xdb   : > { %v416_v27 = vmax.f32 %v413_v26, 0.0 }
  0xdd   : > { %v434_v28 = vpack.c.bf16 %v416_v27, %v416_v27 }
  0xdf   : > { %492 = vmatmul.bf16.vlgmr.msra.gmra.mxu1 %v434_v28 }
  0xe0   : > { %v414_v29 = vpop.f32.mrf.mxu0 }
 0x15c   : > { %v493_v39 = vpop.f32.mrf.mxu1 }
 0x15d   : > { %v494_v40 = vadd.f32 %v1080_v38, %v493_v39 }
 0x15f   : > { %v497_v41 = vmax.f32 %v494_v40, 0.0 }
 0x161   : > { %v515_v42 = vpack.c.bf16 %v497_v41, %v497_v41 }
 0x163   : > { %573 = vmatmul.bf16.vlgmr.msra.gmra.mxu2 %v515_v42 }
 0x164   : > { %v495_v43 = vpop.f32.mrf.mxu1 }
 0x1e6   : > { %v574_v47 = vpop.f32.mrf.mxu2 }
 0x1e7   : > { %v575_v48 = vadd.f32 %v1081_v46, %v574_v47 }
 0x1e9   : > { %v578_v49 = vmax.f32 %v575_v48, 0.0 }
 0x1eb   : > { %v596_v50 = vpack.c.bf16 %v578_v49, %v578_v49 }
 0x1ed   : > { %654 = vmatmul.bf16.vlgmr.msra.gmra.mxu3 %v596_v50 }
 0x1ee   : > { %v576_v51 = vpop.f32.mrf.mxu2 }
 0x270   : > { %v655_v55 = vpop.f32.mrf.mxu3 }
 0x271   : > { %v656_v56 = vadd.f32 %v1082_v54, %v655_v55 }
 0x273   : > { %v662_v57 = vsel %vm661_vm0, %v656_v56, -1e+30 }
 0x274   : > { %663 = vmax.xlane.f32.xlu0 %v662_v57 }
 0x278   : > { %v657_v58 = vpop.f32.mrf.mxu3 }
 0x2e7   : > { %v664_v59 = vpop.xlane.xlu0 %663 }
 0x2e8   : > { %v665_v60 = vsub.f32 %v662_v57, %v664_v59 }
 0x2ea   : > { %v666_v61 = vmul.f32 1.442695, %v665_v60 }
 0x2ec   : > { %1083 = vpow2.f32 %v666_v61 }
 0x2f2   : > { %v1084_v62 = vpop.eup %1083 }
 0x2f3   : > { %668 = vadd.xlane.f32.xlu0 %v1084_v62 }
 0x366   : > { %v669_v63 = vpop.xlane.xlu0 %668 }
 0x367   : > { %1085 = vrcp.f32 %v669_v63  ;;  %v681_v3 = vand.u32 2147483648, %v669_v63  ;;  %v679_v5 = vand.u32 2147483647, %v669_v63  ;;  %vm675_vm2 = vweird.f32 %v669_v63 }
 0x369   : > { %v682_v7 = vor.u32 1.1754944e-38, %v681_v3  ;;  %vm680_vm4 = vcmp.eq.f32.partialorder %v679_v5, 8.507059e+37 }
 0x36d   : > { %v1086_v0 = vpop.eup %1085 }
 0x36e   : > { %v671_v1 = vmul.f32 %v1086_v0, %v669_v63  ;;  %vm676_vm1 = vweird.f32 %v1086_v0 }
 0x36f   : > { %vm677_vm3 = vmor %vm675_vm2, %vm676_vm1 }
 0x370   : > { %v672_v2 = vsub.f32 1.0, %v671_v1 }
 0x372   : > { %v673_v4 = vmul.f32 %v1086_v0, %v672_v2 }
 0x374   : > { %v674_v6 = vadd.f32 %v1086_v0, %v673_v4 }
 0x376   : > { %v678_v8 = vsel %vm677_vm3, %v1086_v0, %v674_v6 }
 0x377   : > { %v683_v9 = vsel %vm680_vm4, %v682_v7, %v678_v8 }
 0x378   : > { %v684_v10 = vmul.f32 %v1084_v62, %v683_v9 }
 0x37a   : > { %685 = vst [vmem:[%s334_s30] sm:$0xff] %v684_v10 }
 0x37b   : > { %1264 = shalt.err (!%p1261_p9)
}
 0x37c   : > { %1008 = dma.vmem_to_hbm [thread:$0]  (%p1441_p4), %s700_s1, 128, %s702_s29, %s687_s28  }
 0x37d PF: > { %s713_s15 = sand.u32 1, %s1299_s21   ;;  %p1556_p10 = scmp.ge.s32.totalorder %s1311_s24, 2 }
 0x37e   : > { %s714_s18 = scalar_lea.sflag [#allocation4], %s713_s15 }
 0x37f   : > { %p1028_p13 = pnand %p1556_p10, %p1445_p6 }
 0x381   : > { %p1029_p11 = pneg %p1028_p13 }
 0x383   : > { %1294 = dma.done.wait (%p1029_p11), %s714_s18, 128  }
 0x384   : > { %1296 = vsyncadd (%p1029_p11), %s714_s18, 4294967168  ;;  %p21_p0 = scmp.ge.s32.totalorder %s1415_s9, 4   ;;  %s1557_s21 = smov %s1303_s22 }
 0x385   : > { %s1558_s22 = smov %s1307_s23  ;;  %s1559_s23 = smov %s1426_s13 }
 0x386   : > { %s1560_s24 = smov %s1415_s9  ;;  %23 = sbr.rel (!%p21_p0) target bundleno = 9 (0x9), region = 105 }
 0x38b   :  { %720 = vsyncpa [#allocation3], 1 }
 0x38c   :  { %722 = vsyncpa [#allocation3 + $0x1], 1 }
 0x38d   :  { %723 = vsyncpa [#allocation6], 1 }
 0x38e   :  { %724 = vsyncpa [#allocation9], 1 }
 0x38f   :  { %725 = vsyncpa [#allocation4], 1 }
 0x390   :  { %727 = vsyncpa [#allocation4 + $0x1], 1 }

</bundles_post_ra>
